<compile_context>
chip_gen: v5e
topology: v5e:2x2
jax: 0.10.0
libtpu: 0.0.40
codegen_flags: <defaults>
</compile_context>

<pallas_src>
import functools
import math

import jax
import jax.numpy as jnp
from jax import lax
from jax.experimental import pallas as pl
from jax.experimental.pallas import tpu as pltpu


def _round_up(x, m):
    return (x + m - 1) // m * m


# --------------------------------------------------------------------------
# Kernel 1: input_proj 1x1 conv (bf16 MXU, f32 acc) -> per-channel sum / sum-sq
#           for GroupNorm.  No feature-map intermediate is written to HBM.
# --------------------------------------------------------------------------

def _conv_stats_kernel(x_ref, w_ref, b_ref, sum_ref, ssq_ref, *, hw, thw):
    t = pl.program_id(1)
    y = jnp.dot(x_ref[...], w_ref[...],
                preferred_element_type=jnp.float32) + b_ref[...]        # (thw, Cout)

    @pl.when(t == 0)
    def _():
        sum_ref[...] = jnp.zeros_like(sum_ref)
        ssq_ref[...] = jnp.zeros_like(ssq_ref)

    last = pl.num_programs(1) - 1

    @pl.when(t != last)                       # steady state: no masking work
    def _():
        sum_ref[...] += jnp.sum(y, axis=0, keepdims=True)
        ssq_ref[...] += jnp.sum(y * y, axis=0, keepdims=True)

    @pl.when(t == last)                       # only the last tile may contain padding
    def _():
        row = lax.broadcasted_iota(jnp.int32, (thw, 1), 0) + t * thw
        m = (row < hw).astype(jnp.float32)
        ym = y * m
        sum_ref[...] += jnp.sum(ym, axis=0, keepdims=True)
        ssq_ref[...] += jnp.sum(ym * y, axis=0, keepdims=True)


# --------------------------------------------------------------------------
# Kernel 2: recompute the 1x1 conv, apply the GroupNorm affine, add positional +
#           level embedding, emit the flattened bf16 "memory" for this level.
# --------------------------------------------------------------------------

def _conv_affine_posadd_kernel(x_ref, w_ref, b_ref, pos_ref, scale_ref, shift_ref,
                               o_ref):
    y = jnp.dot(x_ref[...], w_ref[...],
                preferred_element_type=jnp.float32) + b_ref[...]
    o_ref[...] = (y * scale_ref[...] + shift_ref[...]
                  + pos_ref[...]).astype(o_ref.dtype)


def conv1x1_gn_posadd(x_nhwc, w, b, gamma, beta, pos_plus_level,
                      num_groups=32, eps=1e-5, hw_tile=1024):
    """input_proj (1x1 conv) + GroupNorm(32) + (pos + level_embed) add.

    Returns (memory_bf16 of shape [B, HWp, Cout], HW).  hw_tile=1024 keeps the
    per-step DMA near the HBM roofline while staying well inside VMEM on all of
    v5e / v6e / v7x.
    """
    B, H, W, Cin = x_nhwc.shape
    Cout = w.shape[1]
    HW = H * W
    G = num_groups
    cpg = Cout // G

    thw = min(hw_tile, _round_up(HW, 8))
    HWp = _round_up(HW, thw)
    nT = HWp // thw

    x2 = x_nhwc.reshape(B, HW, Cin)
    if HWp != HW:
        x2 = jnp.pad(x2, ((0, 0), (0, HWp - HW), (0, 0)))
    x2 = x2.astype(jnp.bfloat16)
    wb = w.astype(jnp.bfloat16)
    b2 = b.reshape(1, Cout)

    pos = pos_plus_level
    if HWp != HW:
        pos = jnp.pad(pos, ((0, HWp - HW), (0, 0)))

    csum, cssq = pl.pallas_call(
        functools.partial(_conv_stats_kernel, hw=HW, thw=thw),
        out_shape=(jax.ShapeDtypeStruct((B, 1, Cout), jnp.float32),
                   jax.ShapeDtypeStruct((B, 1, Cout), jnp.float32)),
        grid=(B, nT),
        in_specs=[
            pl.BlockSpec((None, thw, Cin), lambda bi, ti: (bi, ti, 0)),
            pl.BlockSpec((Cin, Cout), lambda bi, ti: (0, 0)),
            pl.BlockSpec((1, Cout), lambda bi, ti: (0, 0)),
        ],
        out_specs=(pl.BlockSpec((None, 1, Cout), lambda bi, ti: (bi, 0, 0)),
                   pl.BlockSpec((None, 1, Cout), lambda bi, ti: (bi, 0, 0))),
        compiler_params=pltpu.CompilerParams(
            dimension_semantics=("parallel", "arbitrary")),
    )(x2, wb, b2)

    # Group statistics from per-channel sums (tiny; plain JAX glue).
    # NOTE: single-pass E[x^2]-E[x]^2 in f32 with a clamp; fine for activation-scale
    # inputs, switch to a two-pass centered form if activations become very large.
    sum_c = csum[:, 0, :]                                   # (B, Cout)
    ssq_c = cssq[:, 0, :]
    cnt = float(HW * cpg)
    gsum = sum_c.reshape(B, G, cpg).sum(-1)
    gssq = ssq_c.reshape(B, G, cpg).sum(-1)
    mean = gsum / cnt
    var = jnp.maximum(gssq / cnt - mean * mean, 0.0)        # clamp: no rsqrt(<0) NaN
    inv = lax.rsqrt(var + eps)
    mean_c = jnp.repeat(mean, cpg, axis=-1)                 # (B, Cout)
    inv_c = jnp.repeat(inv, cpg, axis=-1)
    scale = inv_c * gamma[None, :]
    shift = beta[None, :] - mean_c * scale

    mem = pl.pallas_call(
        _conv_affine_posadd_kernel,
        out_shape=jax.ShapeDtypeStruct((B, HWp, Cout), jnp.bfloat16),
        grid=(B, nT),
        in_specs=[
            pl.BlockSpec((None, thw, Cin), lambda bi, ti: (bi, ti, 0)),
            pl.BlockSpec((Cin, Cout), lambda bi, ti: (0, 0)),
            pl.BlockSpec((1, Cout), lambda bi, ti: (0, 0)),
            pl.BlockSpec((thw, Cout), lambda bi, ti: (ti, 0)),
            pl.BlockSpec((None, 1, Cout), lambda bi, ti: (bi, 0, 0)),
            pl.BlockSpec((None, 1, Cout), lambda bi, ti: (bi, 0, 0)),
        ],
        out_specs=pl.BlockSpec((None, thw, Cout), lambda bi, ti: (bi, ti, 0)),
        compiler_params=pltpu.CompilerParams(
            dimension_semantics=("parallel", "parallel")),
    )(x2, wb, b2, pos, scale.reshape(B, 1, Cout), shift.reshape(B, 1, Cout))
    return mem, HW


# --------------------------------------------------------------------------
# Kernel 3: encoder stand-in — per-token linear fused with masked sum-pool into a
#           resident (1, D) accumulator; full (B, S, D) output never hits HBM.
# --------------------------------------------------------------------------

def _encoder_pool_kernel(x_ref, w_ref, b_ref, acc_ref, *, hw, thw):
    t = pl.program_id(1)

    @pl.when(t == 0)
    def _():
        acc_ref[...] = jnp.zeros_like(acc_ref)

    z = jnp.dot(x_ref[...], w_ref[...],
                preferred_element_type=jnp.float32) + b_ref[...]       # (thw, D)
    last = pl.num_programs(1) - 1

    @pl.when(t != last)
    def _():
        acc_ref[...] += jnp.sum(z, axis=0, keepdims=True)

    @pl.when(t == last)
    def _():
        row = lax.broadcasted_iota(jnp.int32, (thw, 1), 0) + t * thw
        m = (row < hw).astype(jnp.float32)
        acc_ref[...] += jnp.sum(z * m, axis=0, keepdims=True)


def encoder_linear_pool(mem_bf16, enc_w, enc_b, hw, hw_tile=1024):
    """Encoder stand-in: per-token linear, summed over the valid tokens of a level.

    TODO(synk): the real multi-scale deformable attention would consume the full
    per-token memory; only the pooled summary is needed by this stand-in, so the
    full (B, S, D) encoder output is intentionally not emitted.
    """
    B, HWp, D = mem_bf16.shape
    thw = min(hw_tile, _round_up(hw, 8))        # same tiling rule as the conv pass
    nT = HWp // thw
    pooled = pl.pallas_call(
        functools.partial(_encoder_pool_kernel, hw=hw, thw=thw),
        out_shape=jax.ShapeDtypeStruct((B, 1, D), jnp.float32),
        grid=(B, nT),
        in_specs=[
            pl.BlockSpec((None, thw, D), lambda bi, ti: (bi, ti, 0)),
            pl.BlockSpec((D, D), lambda bi, ti: (0, 0)),
            pl.BlockSpec((1, D), lambda bi, ti: (0, 0)),
        ],
        out_specs=pl.BlockSpec((None, 1, D), lambda bi, ti: (bi, 0, 0)),
        compiler_params=pltpu.CompilerParams(
            dimension_semantics=("parallel", "arbitrary")),
    )(mem_bf16, enc_w.astype(jnp.bfloat16), enc_b.reshape(1, D))
    return pooled                                  # (B, 1, D) sum over valid tokens


# --------------------------------------------------------------------------
# Kernel 4: fused decoder loop + detection heads, grid=(B,) "parallel"
# --------------------------------------------------------------------------

def _decoder_heads_kernel(tgt_ref, ref0_ref, mem_ref,
                          dec_w_ref, dec_b_ref,
                          wcat_ref, bcat_ref, w2_ref, b2_ref, w3_ref, b3_ref,
                          logits_ref, coords_ref, *, num_layers, d_model, eps):
    x = tgt_ref[...]          # (Q, D)   decoder query content embedding
    r = ref0_ref[...]         # (Q, 128) sigmoid-space anchors; lanes >= 5 are zero
    mp = mem_ref[...]         # (1, D)   pooled encoder memory for this batch element

    # L is tiny -> static unroll keeps all load/store indices static and lets the
    # scheduler see the whole chain; every per-layer weight stays VMEM-resident.
    for l in range(num_layers):
        # decoder layer stand-in: x += relu((x + mem) @ W_l + b_l)
        inp = (x + mp).astype(jnp.bfloat16)
        upd = jnp.maximum(
            jnp.dot(inp, dec_w_ref[l], preferred_element_type=jnp.float32)
            + dec_b_ref[l], 0.0)
        x = x + upd                                                     # hs[l]

        # fused [bbox-MLP layer-1 | class head]: one 256-wide matmul fills the
        # 256-lane MXU on v6e/v7x and removes a separate result-FIFO drain.
        xb = x.astype(jnp.bfloat16)
        hc = jnp.dot(xb, wcat_ref[...],
                     preferred_element_type=jnp.float32) + bcat_ref[...]
        h = jnp.maximum(hc[:, :d_model], 0.0)
        logits = hc[:, d_model:]

        h = jnp.maximum(
            jnp.dot(h.astype(jnp.bfloat16), w2_ref[...],
                    preferred_element_type=jnp.float32) + b2_ref[...], 0.0)
        tmp = jnp.dot(h.astype(jnp.bfloat16), w3_ref[...],
                      preferred_element_type=jnp.float32) + b3_ref[l]   # (Q, 128)

        # Box refinement: new_ref = sigmoid(tmp + inverse_sigmoid(ref)).  With
        # with_box_refine=True the decoder's bbox_embed IS the per-layer clone used
        # by the heads, so this equals outputs_coord[l]; if the clones were ever
        # untied, a separate heads pass would be needed.  Padded lanes (ref == 0)
        # stay finite because of the eps clamp below — do not remove it.
        rc = jnp.clip(r, 0.0, 1.0)
        inv = jnp.log(jnp.maximum(rc, eps)) - jnp.log(jnp.maximum(1.0 - rc, eps))
        new_ref = jax.nn.sigmoid(tmp + inv)
        r = new_ref

        logits_ref[l] = logits
        coords_ref[l] = new_ref


def transformer_and_heads(memories, hws, query_embeds, params, num_dec_layers,
                          num_classes):
    # TODO(synk): multi-scale deformable attention (grid_sample based) has no clean
    # Pallas equivalent; encoder/decoder layers are simplified stand-ins that still
    # exercise the Pallas matmul path and the shared bbox_embed refinement.
    D = params['enc_w'].shape[0]
    B = query_embeds.shape[0]
    L = num_dec_layers

    # encoder stand-in: linear + mean pool over the valid tokens of every level,
    # accumulated per level (no concat, no full encoder output written to HBM).
    pooled = jnp.zeros((B, 1, D), jnp.float32)
    total = 0
    for mem, hw in zip(memories, hws):
        pooled = pooled + encoder_linear_pool(mem, params['enc_w'],
                                              params['enc_b'], hw)
        total += hw
    mem_pool = pooled / float(total)                                     # (B, 1, D)

    tgt = query_embeds[..., :D]                                          # [B, Q, D]
    refanchor = query_embeds[..., D:]                                    # [B, Q, 5]
    Q = tgt.shape[1]
    PB = 128                                                             # lane-dense pad
    Cpad = _round_up(max(num_classes, 1), 128)

    ref0 = jnp.pad(jax.nn.sigmoid(refanchor), ((0, 0), (0, 0), (0, PB - 5)))
    Qp = _round_up(Q, 8)
    if Qp != Q:
        tgt = jnp.pad(tgt, ((0, 0), (0, Qp - Q), (0, 0)))
        ref0 = jnp.pad(ref0, ((0, 0), (0, Qp - Q), (0, 0)))

    # cloned per-layer weights are identical at init except bbox layer-3 bias of
    # clone 0 -> pass shared copies once and only b3 per layer.
    wc = jnp.pad(params['class_w'], ((0, 0), (0, Cpad - num_classes)))
    bc = jnp.pad(params['class_b'], (0, Cpad - num_classes))
    wcat = jnp.concatenate([params['bbox_w1'], wc], axis=1).astype(jnp.bfloat16)
    bcat = jnp.concatenate([params['bbox_b1'], bc]).reshape(1, D + Cpad)
    w3 = jnp.pad(params['bbox_w3'], ((0, 0), (0, PB - 5))).astype(jnp.bfloat16)
    b3 = jnp.pad(params['bbox_b3'], ((0, 0), (0, PB - 5))).reshape(L, 1, PB)

    logits_pad, coords_pad = pl.pallas_call(
        functools.partial(_decoder_heads_kernel, num_layers=L, d_model=D, eps=1e-3),
        out_shape=(jax.ShapeDtypeStruct((B, L, Qp, Cpad), jnp.float32),
                   jax.ShapeDtypeStruct((B, L, Qp, PB), jnp.float32)),
        grid=(B,),
        in_specs=[
            pl.BlockSpec((None, Qp, D), lambda b: (b, 0, 0)),     # tgt
            pl.BlockSpec((None, Qp, PB), lambda b: (b, 0, 0)),    # ref0 (padded)
            pl.BlockSpec((None, 1, D), lambda b: (b, 0, 0)),      # pooled memory
            pl.BlockSpec((L, D, D), lambda b: (0, 0, 0)),         # dec_w (all layers)
            pl.BlockSpec((L, 1, D), lambda b: (0, 0, 0)),         # dec_b
            pl.BlockSpec((D, D + Cpad), lambda b: (0, 0)),        # [bbox w1 | class w]
            pl.BlockSpec((1, D + Cpad), lambda b: (0, 0)),        # [bbox b1 | class b]
            pl.BlockSpec((D, D), lambda b: (0, 0)),               # bbox w2 (shared)
            pl.BlockSpec((1, D), lambda b: (0, 0)),               # bbox b2
            pl.BlockSpec((D, PB), lambda b: (0, 0)),              # bbox w3 (padded)
            pl.BlockSpec((L, 1, PB), lambda b: (0, 0, 0)),        # bbox b3[l] (padded)
        ],
        out_specs=(pl.BlockSpec((None, L, Qp, Cpad), lambda b: (b, 0, 0, 0)),
                   pl.BlockSpec((None, L, Qp, PB), lambda b: (b, 0, 0, 0))),
        compiler_params=pltpu.CompilerParams(
            dimension_semantics=("parallel",)),
    )(tgt, ref0, mem_pool,
      params['dec_w'].astype(jnp.bfloat16), params['dec_b'].reshape(L, 1, D),
      wcat, bcat,
      params['bbox_w2'].astype(jnp.bfloat16), params['bbox_b2'].reshape(1, D),
      w3, b3)

    outputs_class = jnp.transpose(logits_pad, (1, 0, 2, 3))[:, :, :Q, :num_classes]
    outputs_coord = jnp.transpose(coords_pad, (1, 0, 2, 3))[:, :, :Q, :5]
    return outputs_class, outputs_coord


# --------------------------------------------------------------------------
# Glue (plain JAX): parameters, backbone stand-in, forward
# --------------------------------------------------------------------------

def sine_pos_embed(h, w, d):
    # Stand-in for PositionEmbeddingSine (glue, not hot path).
    y = jnp.arange(h, dtype=jnp.float32)[:, None, None]
    x = jnp.arange(w, dtype=jnp.float32)[None, :, None]
    dim_t = jnp.arange(d // 2, dtype=jnp.float32)[None, None, :]
    freq = 1.0 / (10000.0 ** (2.0 * (dim_t // 2) / (d // 2)))
    pos_x = jnp.broadcast_to(jnp.sin(x * freq), (h, w, d // 2))
    pos_y = jnp.broadcast_to(jnp.cos(y * freq), (h, w, d // 2))
    return jnp.concatenate([pos_x, pos_y], axis=-1)


def fake_backbone(images_nhwc, strides, channels):
    # TODO(synk): real ResNet backbone is an external module; deterministic
    # strided-average-pooling + channel-tiling stand-in used instead.
    B, H, W, Cimg = images_nhwc.shape
    feats, masks = [], []
    for s, c in zip(strides, channels):
        h, w = H // s, W // s
        pooled = images_nhwc.reshape(B, h, s, w, s, Cimg).mean(axis=(2, 4))
        reps = c // Cimg + 1
        feat = jnp.tile(pooled, (1, 1, 1, reps))[..., :c]
        feat = feat * (1.0 + jnp.arange(c, dtype=jnp.float32) / c)
        feats.append(feat)
        masks.append(jnp.zeros((B, h, w), dtype=bool))   # no padded pixels
    return feats, masks


def init_params(key, *, hidden_dim, num_classes, num_queries,
                num_feature_levels, backbone_channels, num_dec_layers):
    keys = jax.random.split(key, 20)
    D = hidden_dim
    L = num_dec_layers
    p = {}
    # input_proj: xavier_uniform weight, zero bias; GroupNorm affine = (1, 0)
    p['proj_w'], p['proj_b'], p['gn_gamma'], p['gn_beta'] = [], [], [], []
    for i, cin in enumerate(backbone_channels):
        lim = math.sqrt(6.0 / (cin + D))
        p['proj_w'].append(jax.random.uniform(keys[i], (cin, D), jnp.float32, -lim, lim))
        p['proj_b'].append(jnp.zeros((D,), jnp.float32))
        p['gn_gamma'].append(jnp.ones((D,), jnp.float32))
        p['gn_beta'].append(jnp.zeros((D,), jnp.float32))
    # DAB query embeddings (nn.Embedding ~ N(0,1)) and label encoder
    p['tgt_embed'] = jax.random.normal(keys[5], (num_queries, D - 1), jnp.float32)
    p['refpoint_embed'] = jax.random.normal(keys[6], (num_queries, 5), jnp.float32)
    p['label_enc'] = jax.random.normal(keys[7], (num_classes + 1, D - 1), jnp.float32)
    # class_embed: L identical clones at init -> stored once; bias = prior-prob bias
    bias_value = -math.log((1 - 0.01) / 0.01)
    lim = math.sqrt(6.0 / (D + num_classes))
    p['class_w'] = jax.random.uniform(keys[8], (D, num_classes), jnp.float32, -lim, lim)
    p['class_b'] = jnp.full((num_classes,), bias_value, jnp.float32)
    # bbox_embed MLP(hidden, hidden, 5, 3): last layer zero-init; after cloning only
    # clone 0's last bias differs (bias[2:] = -2.0) -> keep b3 per layer, rest shared.
    lim = math.sqrt(6.0 / (D + D))
    p['bbox_w1'] = jax.random.uniform(keys[9], (D, D), jnp.float32, -lim, lim)
    p['bbox_b1'] = jnp.zeros((D,), jnp.float32)
    p['bbox_w2'] = jax.random.uniform(keys[10], (D, D), jnp.float32, -lim, lim)
    p['bbox_b2'] = jnp.zeros((D,), jnp.float32)
    p['bbox_w3'] = jnp.zeros((D, 5), jnp.float32)
    p['bbox_b3'] = jnp.zeros((L, 5), jnp.float32).at[0, 2:].set(-2.0)
    # transformer stand-in parameters
    p['level_embed'] = 0.02 * jax.random.normal(keys[11], (num_feature_levels, D),
                                                jnp.float32)
    p['enc_w'] = jnp.eye(D, dtype=jnp.float32) + \
        0.01 * jax.random.normal(keys[12], (D, D), jnp.float32)
    p['enc_b'] = jnp.zeros((D,), jnp.float32)
    p['dec_w'] = 0.05 * jax.random.normal(keys[13], (L, D, D), jnp.float32)
    p['dec_b'] = jnp.zeros((L, D), jnp.float32)
    return p


def dab_deformable_detr_forward(images_nhwc, params, config):
    D = config['hidden_dim']
    B = images_nhwc.shape[0]
    nq = config['num_queries']

    feats, masks = fake_backbone(images_nhwc, config['strides'],
                                 config['backbone_channels'])
    del masks  # stand-in backbone has no padded pixels

    # input_proj (hot path): Pallas 1x1 conv + GroupNorm(32) fused with the
    # pos/level-embed add, written once per level in bf16.
    memories, hws = [], []
    for li, f in enumerate(feats):
        h, w = f.shape[1], f.shape[2]
        pos = (sine_pos_embed(h, w, D)
               + params['level_embed'][li][None, None, :]).reshape(h * w, D)
        mem, hw = conv1x1_gn_posadd(f, params['proj_w'][li], params['proj_b'][li],
                                    params['gn_gamma'][li], params['gn_beta'][li],
                                    pos)
        memories.append(mem)
        hws.append(hw)

    # prepare_for_dn at inference with dn_args=0: no denoising queries
    indicator0 = jnp.zeros((nq, 1), jnp.float32)
    tgt = jnp.concatenate([params['tgt_embed'], indicator0], axis=1)        # [Q, D]
    input_query_label = jnp.tile(tgt[None], (B, 1, 1))                      # [B, Q, D]
    input_query_bbox = jnp.tile(params['refpoint_embed'][None], (B, 1, 1))  # [B, Q, 5]
    mask_dict = None
    query_embeds = jnp.concatenate([input_query_label, input_query_bbox], axis=2)

    outputs_class, outputs_coord = transformer_and_heads(
        memories, hws, query_embeds, params, config['num_dec_layers'],
        config['num_classes'])

    # dn_post_process is a no-op because mask_dict is None at inference
    out = {'pred_logits': outputs_class[-1], 'pred_boxes': outputs_coord[-1]}
    out['aux_outputs'] = [{'pred_logits': a, 'pred_boxes': b}
                          for a, b in zip(outputs_class[:-1], outputs_coord[:-1])]
    return out, mask_dict


if __name__ == "__main__":
    # lane-aligned toy config: hidden_dim / Cout / MLP width = 128
    config = dict(hidden_dim=128, num_classes=7, num_queries=16,
                  num_feature_levels=2, strides=(8, 16),
                  backbone_channels=(128, 256), num_dec_layers=3)
    key = jax.random.PRNGKey(0)
    kp, kx = jax.random.split(key)
    params = init_params(kp,
                         hidden_dim=config['hidden_dim'],
                         num_classes=config['num_classes'],
                         num_queries=config['num_queries'],
                         num_feature_levels=config['num_feature_levels'],
                         backbone_channels=config['backbone_channels'],
                         num_dec_layers=config['num_dec_layers'])
    # layout: NHWC images, batch=2, 64x64x3
    images = jax.random.normal(kx, (2, 64, 64, 3), jnp.float32)

    out, mask_dict = dab_deformable_detr_forward(images, params, config)
    jax.block_until_ready(out['pred_logits'])
    jax.block_until_ready(out['pred_boxes'])
    for aux in out['aux_outputs']:
        jax.block_until_ready(aux['pred_logits'])
        jax.block_until_ready(aux['pred_boxes'])

    assert out['pred_logits'].shape == (2, config['num_queries'], config['num_classes'])
    assert out['pred_boxes'].shape == (2, config['num_queries'], 5)
    assert len(out['aux_outputs']) == config['num_dec_layers'] - 1
    assert bool(jnp.all(jnp.isfinite(out['pred_logits'])))
    assert bool(jnp.all(out['pred_boxes'] >= 0.0)) and bool(jnp.all(out['pred_boxes'] <= 1.0))
    print("KERNEL_OK")
</pallas_src>

<mosaic_0001>
module attributes {stable_mosaic.version = 11 : i64} {
  func.func @_conv_stats_kernel(%arg0: i32, %arg1: i32, %arg2: memref<1x64x128xbf16, #tpu.memory_space<vmem>>, %arg3: memref<128x128xbf16, #tpu.memory_space<vmem>>, %arg4: memref<1x128xf32, #tpu.memory_space<vmem>>, %arg5: memref<1x1x128xf32, #tpu.memory_space<vmem>>, %arg6: memref<1x1x128xf32, #tpu.memory_space<vmem>>) attributes {dimension_semantics = [#tpu.dimension_semantics<parallel>, #tpu.dimension_semantics<arbitrary>], iteration_bounds = array<i64: 2, 1>, scalar_prefetch = 0 : i64, scratch_operands = 0 : i64, tpu.core_type = #tpu.core_type<tc>, window_params = [{transform_indices = @transform_0, window_bounds = array<i64: 1, 64, 128>}, {pipeline_mode = #tpu.pipeline_mode<synchronous>, transform_indices = @transform_1, window_bounds = array<i64: 128, 128>}, {pipeline_mode = #tpu.pipeline_mode<synchronous>, transform_indices = @transform_2, window_bounds = array<i64: 1, 128>}, {transform_indices = @transform_3, window_bounds = array<i64: 1, 1, 128>}, {transform_indices = @transform_4, window_bounds = array<i64: 1, 1, 128>}]} {
    %c0 = arith.constant 0 : index
    %c0_0 = arith.constant 0 : index
    %c0_1 = arith.constant 0 : index
    %0 = vector.load %arg2[%c0, %c0_0, %c0_1] : memref<1x64x128xbf16, #tpu.memory_space<vmem>>, vector<1x64x128xbf16>
    %1 = vector.shape_cast %0 : vector<1x64x128xbf16> to vector<64x128xbf16>
    %c0_2 = arith.constant 0 : index
    %c0_3 = arith.constant 0 : index
    %2 = vector.load %arg3[%c0_2, %c0_3] : memref<128x128xbf16, #tpu.memory_space<vmem>>, vector<128x128xbf16>
    %cst = arith.constant dense<0.000000e+00> : vector<64x128xf32>
    %3 = tpu.matmul %1, %2, %cst {dimension_numbers = #tpu.dot_dimension_numbers<[1], [0], [0], [1], [0, 0, 1, 1], [], []>} : vector<64x128xbf16>, vector<128x128xbf16>, vector<64x128xf32> -> vector<64x128xf32>
    %c0_4 = arith.constant 0 : index
    %c0_5 = arith.constant 0 : index
    %4 = vector.load %arg4[%c0_4, %c0_5] : memref<1x128xf32, #tpu.memory_space<vmem>>, vector<1x128xf32>
    %5 = vector.broadcast %4 : vector<1x128xf32> to vector<64x128xf32>
    %6 = arith.addf %3, %5 : vector<64x128xf32>
    %c0_i32 = arith.constant 0 : i32
    %7 = arith.cmpi eq, %arg1, %c0_i32 : i32
    %8 = arith.extui %7 : i1 to i32
    %c0_i32_6 = arith.constant 0 : i32
    %9 = arith.cmpi ne, %8, %c0_i32_6 : i32
    scf.if %9 {
      %cst_11 = arith.constant 0.000000e+00 : f32
      %16 = vector.broadcast %cst_11 : f32 to vector<1x128xf32>
      %c0_12 = arith.constant 0 : index
      %c0_13 = arith.constant 0 : index
      %c0_14 = arith.constant 0 : index
      %17 = vector.load %arg5[%c0_12, %c0_13, %c0_14] : memref<1x1x128xf32, #tpu.memory_space<vmem>>, vector<1x1x128xf32>
      %18 = vector.shape_cast %17 : vector<1x1x128xf32> to vector<1x128xf32>
      %19 = vector.shape_cast %16 : vector<1x128xf32> to vector<1x1x128xf32>
      tpu.vector_store %arg5[%c0_12, %c0_13, %c0_14], %19 {strides = array<i32>} : memref<1x1x128xf32, #tpu.memory_space<vmem>>, vector<1x1x128xf32>,
      %cst_15 = arith.constant 0.000000e+00 : f32
      %20 = vector.broadcast %cst_15 : f32 to vector<1x128xf32>
      %c0_16 = arith.constant 0 : index
      %c0_17 = arith.constant 0 : index
      %c0_18 = arith.constant 0 : index
      %21 = vector.load %arg6[%c0_16, %c0_17, %c0_18] : memref<1x1x128xf32, #tpu.memory_space<vmem>>, vector<1x1x128xf32>
      %22 = vector.shape_cast %21 : vector<1x1x128xf32> to vector<1x128xf32>
      %23 = vector.shape_cast %20 : vector<1x128xf32> to vector<1x1x128xf32>
      tpu.vector_store %arg6[%c0_16, %c0_17, %c0_18], %23 {strides = array<i32>} : memref<1x1x128xf32, #tpu.memory_space<vmem>>, vector<1x1x128xf32>,
    } else {
    }
    %c0_i32_7 = arith.constant 0 : i32
    %10 = arith.cmpi ne, %arg1, %c0_i32_7 : i32
    %11 = arith.extui %10 : i1 to i32
    %c0_i32_8 = arith.constant 0 : i32
    %12 = arith.cmpi ne, %11, %c0_i32_8 : i32
    scf.if %12 {
      %c0_11 = arith.constant 0 : index
      %c0_12 = arith.constant 0 : index
      %c0_13 = arith.constant 0 : index
      %16 = vector.load %arg5[%c0_11, %c0_12, %c0_13] : memref<1x1x128xf32, #tpu.memory_space<vmem>>, vector<1x1x128xf32>
      %17 = vector.shape_cast %16 : vector<1x1x128xf32> to vector<1x128xf32>
      %cst_14 = arith.constant dense<0.000000e+00> : vector<128xf32>
      %18 = vector.multi_reduction <add>, %6, %cst_14 [0] : vector<64x128xf32> to vector<128xf32>
      %19 = vector.shape_cast %18 : vector<128xf32> to vector<1x128xf32>
      %20 = arith.addf %17, %19 : vector<1x128xf32>
      %c0_15 = arith.constant 0 : index
      %c0_16 = arith.constant 0 : index
      %c0_17 = arith.constant 0 : index
      %21 = vector.load %arg5[%c0_15, %c0_16, %c0_17] : memref<1x1x128xf32, #tpu.memory_space<vmem>>, vector<1x1x128xf32>
      %22 = vector.shape_cast %21 : vector<1x1x128xf32> to vector<1x128xf32>
      %23 = vector.shape_cast %20 : vector<1x128xf32> to vector<1x1x128xf32>
      tpu.vector_store %arg5[%c0_15, %c0_16, %c0_17], %23 {strides = array<i32>} : memref<1x1x128xf32, #tpu.memory_space<vmem>>, vector<1x1x128xf32>,
      %c0_18 = arith.constant 0 : index
      %c0_19 = arith.constant 0 : index
      %c0_20 = arith.constant 0 : index
      %24 = vector.load %arg6[%c0_18, %c0_19, %c0_20] : memref<1x1x128xf32, #tpu.memory_space<vmem>>, vector<1x1x128xf32>
      %25 = vector.shape_cast %24 : vector<1x1x128xf32> to vector<1x128xf32>
      %26 = arith.mulf %6, %6 : vector<64x128xf32>
      %cst_21 = arith.constant dense<0.000000e+00> : vector<128xf32>
      %27 = vector.multi_reduction <add>, %26, %cst_21 [0] : vector<64x128xf32> to vector<128xf32>
      %28 = vector.shape_cast %27 : vector<128xf32> to vector<1x128xf32>
      %29 = arith.addf %25, %28 : vector<1x128xf32>
      %c0_22 = arith.constant 0 : index
      %c0_23 = arith.constant 0 : index
      %c0_24 = arith.constant 0 : index
      %30 = vector.load %arg6[%c0_22, %c0_23, %c0_24] : memref<1x1x128xf32, #tpu.memory_space<vmem>>, vector<1x1x128xf32>
      %31 = vector.shape_cast %30 : vector<1x1x128xf32> to vector<1x128xf32>
      %32 = vector.shape_cast %29 : vector<1x128xf32> to vector<1x1x128xf32>
      tpu.vector_store %arg6[%c0_22, %c0_23, %c0_24], %32 {strides = array<i32>} : memref<1x1x128xf32, #tpu.memory_space<vmem>>, vector<1x1x128xf32>,
    } else {
    }
    %c0_i32_9 = arith.constant 0 : i32
    %13 = arith.cmpi eq, %arg1, %c0_i32_9 : i32
    %14 = arith.extui %13 : i1 to i32
    %c0_i32_10 = arith.constant 0 : i32
    %15 = arith.cmpi ne, %14, %c0_i32_10 : i32
    scf.if %15 {
      %16 = tpu.iota {dimensions = array<i32: 0>} : vector<64x1xi32>
      %c64_i32 = arith.constant 64 : i32
      %17 = arith.muli %arg1, %c64_i32 : i32
      %18 = vector.broadcast %17 : i32 to vector<64x1xi32>
      %19 = arith.addi %16, %18 : vector<64x1xi32>
      %c64_i32_11 = arith.constant 64 : i32
      %20 = vector.broadcast %c64_i32_11 : i32 to vector<64x1xi32>
      %21 = arith.cmpi slt, %19, %20 : vector<64x1xi32>
      %22 = arith.extui %21 : vector<64x1xi1> to vector<64x1xi32>
      %23 = arith.sitofp %22 : vector<64x1xi32> to vector<64x1xf32>
      %24 = vector.broadcast %23 : vector<64x1xf32> to vector<64x128xf32>
      %25 = arith.mulf %6, %24 : vector<64x128xf32>
      %c0_12 = arith.constant 0 : index
      %c0_13 = arith.constant 0 : index
      %c0_14 = arith.constant 0 : index
      %26 = vector.load %arg5[%c0_12, %c0_13, %c0_14] : memref<1x1x128xf32, #tpu.memory_space<vmem>>, vector<1x1x128xf32>
      %27 = vector.shape_cast %26 : vector<1x1x128xf32> to vector<1x128xf32>
      %cst_15 = arith.constant dense<0.000000e+00> : vector<128xf32>
      %28 = vector.multi_reduction <add>, %25, %cst_15 [0] : vector<64x128xf32> to vector<128xf32>
      %29 = vector.shape_cast %28 : vector<128xf32> to vector<1x128xf32>
      %30 = arith.addf %27, %29 : vector<1x128xf32>
      %c0_16 = arith.constant 0 : index
      %c0_17 = arith.constant 0 : index
      %c0_18 = arith.constant 0 : index
      %31 = vector.load %arg5[%c0_16, %c0_17, %c0_18] : memref<1x1x128xf32, #tpu.memory_space<vmem>>, vector<1x1x128xf32>
      %32 = vector.shape_cast %31 : vector<1x1x128xf32> to vector<1x128xf32>
      %33 = vector.shape_cast %30 : vector<1x128xf32> to vector<1x1x128xf32>
      tpu.vector_store %arg5[%c0_16, %c0_17, %c0_18], %33 {strides = array<i32>} : memref<1x1x128xf32, #tpu.memory_space<vmem>>, vector<1x1x128xf32>,
      %c0_19 = arith.constant 0 : index
      %c0_20 = arith.constant 0 : index
      %c0_21 = arith.constant 0 : index
      %34 = vector.load %arg6[%c0_19, %c0_20, %c0_21] : memref<1x1x128xf32, #tpu.memory_space<vmem>>, vector<1x1x128xf32>
      %35 = vector.shape_cast %34 : vector<1x1x128xf32> to vector<1x128xf32>
      %36 = arith.mulf %25, %6 : vector<64x128xf32>
      %cst_22 = arith.constant dense<0.000000e+00> : vector<128xf32>
      %37 = vector.multi_reduction <add>, %36, %cst_22 [0] : vector<64x128xf32> to vector<128xf32>
      %38 = vector.shape_cast %37 : vector<128xf32> to vector<1x128xf32>
      %39 = arith.addf %35, %38 : vector<1x128xf32>
      %c0_23 = arith.constant 0 : index
      %c0_24 = arith.constant 0 : index
      %c0_25 = arith.constant 0 : index
      %40 = vector.load %arg6[%c0_23, %c0_24, %c0_25] : memref<1x1x128xf32, #tpu.memory_space<vmem>>, vector<1x1x128xf32>
      %41 = vector.shape_cast %40 : vector<1x1x128xf32> to vector<1x128xf32>
      %42 = vector.shape_cast %39 : vector<1x128xf32> to vector<1x1x128xf32>
      tpu.vector_store %arg6[%c0_23, %c0_24, %c0_25], %42 {strides = array<i32>} : memref<1x1x128xf32, #tpu.memory_space<vmem>>, vector<1x1x128xf32>,
    } else {
    }
    return
  }
  func.func @transform_0(%arg0: i32, %arg1: i32) -> (i32, i32, i32) {
    %c0_i32 = arith.constant 0 : i32
    %c0_i32_0 = arith.constant 0 : i32
    return %arg0, %arg1, %c0_i32 : i32, i32, i32
  }
  func.func @transform_1(%arg0: i32, %arg1: i32) -> (i32, i32) {
    %c0_i32 = arith.constant 0 : i32
    %c0_i32_0 = arith.constant 0 : i32
    %c0_i32_1 = arith.constant 0 : i32
    return %c0_i32, %c0_i32_0 : i32, i32
  }
  func.func @transform_2(%arg0: i32, %arg1: i32) -> (i32, i32) {
    %c0_i32 = arith.constant 0 : i32
    %c0_i32_0 = arith.constant 0 : i32
    %c0_i32_1 = arith.constant 0 : i32
    return %c0_i32, %c0_i32_0 : i32, i32
  }
  func.func @transform_3(%arg0: i32, %arg1: i32) -> (i32, i32, i32) {
    %c0_i32 = arith.constant 0 : i32
    %c0_i32_0 = arith.constant 0 : i32
    %c0_i32_1 = arith.constant 0 : i32
    return %arg0, %c0_i32, %c0_i32_0 : i32, i32, i32
  }
  func.func @transform_4(%arg0: i32, %arg1: i32) -> (i32, i32, i32) {
    %c0_i32 = arith.constant 0 : i32
    %c0_i32_0 = arith.constant 0 : i32
    %c0_i32_1 = arith.constant 0 : i32
    return %arg0, %c0_i32, %c0_i32_0 : i32, i32, i32
  }
}

</mosaic_0001>

<bundles_post_ra>
// kernel: tpu_custom_call.1
= control target key start
LH: loop header
LB: loop body
LE: loop exit
PB: predicated region body
PF: predicated region fallthrough
CT: control target
= control target key end

     0   :  { %s1274_s0 = inlined_call_operand.hbm [shape: bf16[2,64,128], index: 0, kind: input, shape index: {}]   ;;  %s1275_s1 = inlined_call_operand.hbm [shape: bf16[128,128], index: 1, kind: input, shape index: {}]   ;;  %s1276_s2 = inlined_call_operand.vmem [shape: f32[1,128], index: 2, kind: input, shape index: {}]   ;;  %s1277_s3 = inlined_call_operand.hbm [shape: f32[2,1,128], index: 3, kind: output, shape index: {0}]   ;;  %s1278_s4 = inlined_call_operand.hbm [shape: f32[2,1,128], index: 4, kind: output, shape index: {1}]  }
   0x1   :  { %1282 = sst [smem:[#allocation15_spill]] %s1275_s1 }
   0x2   :  { %10 = vsyncpa [#allocation3], 0 }
   0x3   :  { %12 = vsyncpa [#allocation3 + $0x1], 0 }
   0x4   :  { %13 = vsyncpa [#allocation6], 0 }
   0x5   :  { %14 = vsyncpa [#allocation4], 0 }
   0x6   :  { %16 = vsyncpa [#allocation4 + $0x1], 0 }
   0x7   :  { %17 = vsyncpa [#allocation9], 0 }
   0x8   :  { %19 = vsyncpa [#allocation9 + $0x1], 0  ;;  %s1068_s15 = smov 0   ;;  %s1070_s16 = smov 0  }
   0x9   :  { %s1072_s17 = smov 0   ;;  %s1074_s18 = smov 0  }
   0xa   :  { %s1076_s19 = smov 0   ;;  %s1078_s20 = smov 0  }
   0xb LB: > { %s679_s21 = sadd.s32 4294967295, %s1037_s20   ;;  %s680_s22 = sadd.s32 4294967294, %s1037_s20   ;;  %s1037_s20 = sphi %s1078_s20, %s25_s20   ;;  %s1033_s19 = sphi %s1076_s19, %s1299_s19   ;;  %s1029_s18 = sphi %s1074_s18, %s1298_s18   ;;  %s1025_s17 = sphi %s1072_s17, %s1297_s17   ;;  %s1021_s16 = sphi %s1070_s16, %s1296_s16   ;;  %s1017_s15 = sphi %s1068_s15, %s1295_s15  }
   0xc   : > { %p59_p0 = scmp.ne.s32.totalorder %s1021_s16, %s1017_s15  ;;  %p1102_p1 = scmp.eq.s32.totalorder %s679_s21, 0 }
   0xd   : > { %p1106_p2 = scmp.eq.s32.totalorder %s679_s21, 1  ;;  %p131_p3 = scmp.eq.s32.totalorder %s680_s22, 1 }
   0xe   : > { %p1112_p4 = por %p1102_p1, %p59_p0  ;;  %p681_p5 = scmp.ge.s32.totalorder %s1037_s20, 1 }
   0xf   : > { %p1117_p6 = por %p131_p3, %p59_p0  ;;  %p164_p7 = scmp.lt.s32.totalorder %s1037_s20, 3 }
  0x10   : > { %s1287_s1 = sld [smem:[#allocation15_spill]]  ;;  %s1039_s5 = smov [#allocation5]  }
  0x11   : > { %p1125_p8 = pnand %p681_p5, %p164_p7  ;;  %s177_s6 = sshll.u32 %s1039_s5, 4  ;;  %s178_s6 = int_to_ptr.vmem [resolvable:$true] %s177_s6 }
  0x12   : > { %p683_p11 = scmp.ge.s32.totalorder %s1037_s20, 2  ;;  %s1279_s7 = smov 64  }
  0x13   : > { %p787_p9 = pneg %p1125_p8  ;;  %s1280_s8 = smov 4  }
  0x14   : > { %s37_s9 = sadd.s32 1, %s1033_s19  ;;  %s46_s10 = sadd.s32 1, %s1025_s17 }
  0x15   : > { %p788_p10 = pnand %p787_p9, %p1102_p1  ;;  %p39_p12 = scmp.ge.s32.totalorder %s37_s9, 2 }
  0x16   : > { %s175_s29 = sshll.u32 %s1287_s1, 4  ;;  %p53_p13 = scmp.ne.s32.totalorder %s1025_s17, %s1021_s16  ;;  %s176_s29 = int_to_ptr.hbm [resolvable:$true] %s175_s29 }
  0x17   : > { %790 = dma.hbm_to_vmem [thread:$0]  (!%p788_p10), %s176_s29, 1024, %s178_s6, [#allocation6], %s1279_s7, %s1279_s7, %s1280_s8  }
  0x18   : > { %p54_p0 = scmp.eq.s32.totalorder %s1037_s20, 0  ;;  %s1301_s9 = smov (%p39_p12, %s37_s9), 0 }
  0x19   : > { %1289 = sst [smem:[#allocation14_spill]] %s1301_s9  ;;  %p1150_p5 = por %p1106_p2, %p53_p13 }
  0x1a   : > { %p1144_p3 = por %p54_p0, %p53_p13  ;;  %s41_s13 = ssub.s32 %s1033_s19, %s1301_s9 }
  0x1b   : > { %p803_p7 = scmp.lt.s32.totalorder %s1037_s20, 2  ;;  %p44_p9 = scmp.eq.s32.totalorder %s41_s13, 0 }
  0x1c   : > { %s194_s14 = sand.u32 1, %s1025_s17   ;;  %s740_s27 = sshll.u32 %s1033_s19, 5 }
  0x1d   : > { %s684_s21 = sshll.u32 %s194_s14, 5  ;;  %s205_s5 = scalar_lea.hbm %s1274_s0, %s740_s27 }
  0x1e   : > { %s1159_s22 = scalar_select %p44_p9, %s1025_s17, %s46_s10  }
  0x1f   : > { %s198_s6 = scalar_lea.vmem [#allocation2], %s684_s21  ;;  %s206_s24 = sshll.u32 %s205_s5, 4  ;;  %s207_s24 = int_to_ptr.hbm [resolvable:$true] %s206_s24 }
  0x20   : > { %s208_s7 = sshll.u32 %s198_s6, 4  ;;  %p792_p2 = pnand %p803_p7, %p1144_p3  ;;  %s209_s7 = int_to_ptr.vmem [resolvable:$true] %s208_s7 }
  0x21   : > { %s195_s8 = scalar_lea.sflag [#allocation3], %s194_s14  ;;  %s1292_s1 = smov 4  }
  0x22   : > { %s1293_s9 = smov 64   ;;  %220 = sbr.rel (%p1125_p8) target bundleno = 253 (0xfd), region = 32 }
  0x23   : > { %794 = dma.hbm_to_vmem [thread:$0]  (!%p792_p2), %s207_s24, 512, %s209_s7, %s195_s8, %s1293_s9, %s1293_s9, %s1292_s1  }
  0x24   : > { %s1173_s10 = sand.u32 (!%p1125_p8), 1, %s1021_s16  }
  0x25   : > { %s688_s13 = sshll.u32 (!%p1125_p8), %s1173_s10, 5  ;;  %s223_s21 = scalar_lea.sflag (!%p1125_p8), [#allocation3], %s1173_s10 }
  0x26   : > { %s1177_s27 = scalar_lea.vmem (!%p1125_p8), [#allocation2], %s688_s13 }
  0x27   : > { %1000 = dma.done.wait (%p1112_p4), %s223_s21, 512  }
  0x28   : > { %1002 = vsyncadd (%p1112_p4), %s223_s21, 4294966784 }
  0x29   : > { %1004 = dma.done.wait (%p1102_p1), [#allocation6], 1024  }
  0x2a   : > { %1006 = vsyncadd (%p1102_p1), [#allocation6], 4294966272  ;;  %v752_v0 = vld [vmem:[#allocation5 + $0x38] sm:$0xff]  ;;  %v751_v1 = vld [vmem:[#allocation5 + $0x30] sm:$0xff]  ;;  %s1192_s1 = scalar_lea.vmem [#allocation7], %s1173_s10  ;;  %v1042_v12 = vmov 0.0   ;;  %s547_s9 = scalar_lea.hbm %s1277_s3, %s1029_s18 }
  0x2b   : > { %361 = vmatpush.bf16.msra.mxu0 %v752_v0  ;;  %753 = vmatpush.bf16.msra.mxu1 %v752_v0  ;;  %v750_v2 = vld [vmem:[#allocation5 + $0x28] sm:$0xff]  ;;  %v749_v3 = vld [vmem:[#allocation5 + $0x20] sm:$0xff]  ;;  %v748_v4 = vld [vmem:[#allocation5 + $0x18] sm:$0xff]  ;;  %394 = vst [vmem:[%s1192_s1] sm:$0x1] %v1042_v12  ;;  %s1196_s23 = scalar_lea.vmem [#allocation8], %s1173_s10  ;;  %s560_s28 = scalar_lea.hbm %s1278_s4, %s1029_s18 }
  0x2c   : > { %754 = vmatpush.bf16.msra.mxu2 %v752_v0  ;;  %755 = vmatpush.bf16.msra.mxu3 %v752_v0  ;;  %v747_v5 = vld [vmem:[#allocation5 + $0x10] sm:$0xff]  ;;  %v746_v6 = vld [vmem:[#allocation5 + $0x8] sm:$0xff]  ;;  %v745_v7 = vld [vmem:[#allocation5] sm:$0xff]  ;;  %395 = vst [vmem:[%s1196_s23] sm:$0x1] %v1042_v12  ;;  %s549_s29 = sshll.u32 %s1192_s1, 4  ;;  %s1212_s5 = sshll.u32 %s547_s9, 4  ;;  %s550_s29 = int_to_ptr.vmem [resolvable:$true] %s549_s29  ;;  %s552_s5 = int_to_ptr.hbm [resolvable:$true] %s1212_s5 }
  0x2d   : > { %v741_v8 = vld [vmem:[%s1177_s27] sm:$0xff]  ;;  %v742_v9 = vld [vmem:[%s1177_s27 + $0x8] sm:$0xff]  ;;  %v743_v10 = vld [vmem:[%s1177_s27 + $0x10] sm:$0xff]  ;;  %s562_s6 = sshll.u32 %s1196_s23, 4  ;;  %s1216_s24 = sshll.u32 %s560_s28, 4  ;;  %s1220_s6 = int_to_ptr.vmem [resolvable:$true] %s562_s6  ;;  %s565_s24 = int_to_ptr.hbm [resolvable:$true] %s1216_s24 }
  0x2e   : > { %v744_v11 = vld [vmem:[%s1177_s27 + $0x18] sm:$0xff]  ;;  %v858_v15 = vld [vmem:[%s1276_s2] ss:$0 sm:$0xff]  ;;  %s535_s18 = scalar_lea.sflag [#allocation4], %s1173_s10  ;;  %s933_s13 = sshra.s32 %s552_s5, 4  ;;  %s934_s13 = int_to_ptr.hbm [resolvable:$true] %s933_s13 }
  0x2f   : > { %362 = vmatpush.bf16.msra.mxu0 %v751_v1  ;;  %756 = vmatpush.bf16.msra.mxu1 %v751_v1  ;;  %s935_s21 = scalar_lea.hbm %s934_s13, 1  ;;  %s939_s30 = scalar_lea.hbm %s1277_s3, 2 }
  0x30   : > { %757 = vmatpush.bf16.msra.mxu2 %v751_v1  ;;  %758 = vmatpush.bf16.msra.mxu3 %v751_v1  ;;  %p936_p1 = scmp.ne.s32.totalorder %s934_s13, %s935_s21  ;;  %p940_p10 = scmp.lt.s32.totalorder %s934_s13, %s1277_s3 }
  0x31   : > { %p941_p12 = scmp.lt.s32.totalorder %s939_s30, %s935_s21 }
  0x32   : > { %v494_v61 = vld [vmem:[%s1192_s1] sm:$0x1]  ;;  %p937_p4 = pnand %p936_p1, %p1150_p5 }
  0x33   : > { %363 = vmatpush.bf16.msra.mxu0 %v750_v2  ;;  %759 = vmatpush.bf16.msra.mxu1 %v750_v2  ;;  %v510_v0 = vld [vmem:[%s1196_s23] sm:$0x1]  ;;  %p942_p13 = por %p941_p12, %p940_p10 }
  0x34   : > { %760 = vmatpush.bf16.msra.mxu2 %v750_v2  ;;  %761 = vmatpush.bf16.msra.mxu3 %v750_v2  ;;  %p938_p8 = pneg %p937_p4 }
  0x36   : > { %p943_p0 = pnand %p942_p13, %p938_p8 }
  0x37   : > { %364 = vmatpush.bf16.msra.mxu0 %v749_v3  ;;  %762 = vmatpush.bf16.msra.mxu1 %v749_v3 }
  0x38   : > { %763 = vmatpush.bf16.msra.mxu2 %v749_v3  ;;  %764 = vmatpush.bf16.msra.mxu3 %v749_v3 }
  0x3b   : > { %365 = vmatpush.bf16.msra.mxu0 %v748_v4  ;;  %765 = vmatpush.bf16.msra.mxu1 %v748_v4 }
  0x3c   : > { %766 = vmatpush.bf16.msra.mxu2 %v748_v4  ;;  %767 = vmatpush.bf16.msra.mxu3 %v748_v4 }
  0x3f   : > { %366 = vmatpush.bf16.msra.mxu0 %v747_v5  ;;  %768 = vmatpush.bf16.msra.mxu1 %v747_v5 }
  0x40   : > { %769 = vmatpush.bf16.msra.mxu2 %v747_v5  ;;  %770 = vmatpush.bf16.msra.mxu3 %v747_v5 }
  0x43   : > { %367 = vmatpush.bf16.msra.mxu0 %v746_v6  ;;  %771 = vmatpush.bf16.msra.mxu1 %v746_v6 }
  0x44   : > { %772 = vmatpush.bf16.msra.mxu2 %v746_v6  ;;  %773 = vmatpush.bf16.msra.mxu3 %v746_v6 }
  0x47   : > { %368 = vmatpush.bf16.msra.mxu0 %v745_v7  ;;  %774 = vmatpush.bf16.msra.mxu1 %v745_v7 }
  0x48   : > { %775 = vmatpush.bf16.msra.mxu2 %v745_v7  ;;  %776 = vmatpush.bf16.msra.mxu3 %v745_v7 }
  0x4a   : > { %369 = vmatmul.bf16.vlgmr.msra.gmra.mxu0 %v741_v8  ;;  %374 = vmatmul.bf16.vlgmr.msra.gmra.mxu1 %v742_v9 }
  0x4b   : > { %379 = vmatmul.bf16.vlgmr.msra.gmra.mxu2 %v743_v10  ;;  %384 = vmatmul.bf16.vlgmr.msra.gmra.mxu3 %v744_v11 }
  0xc7   : > { %v370_v13 = vpop.f32.mrf.mxu0  ;;  %v375_v14 = vpop.f32.mrf.mxu1 }
  0xc8   : > { %v371_v16 = vadd.f32 %v858_v15, %v370_v13  ;;  %v376_v21 = vadd.f32 %v858_v15, %v375_v14 }
  0xca   : > { %v511_v23 = vmul.f32 %v371_v16, %v371_v16  ;;  %v513_v27 = vmul.f32 %v376_v21, %v376_v21 }
  0xce   : > { %v380_v17 = vpop.f32.mrf.mxu2  ;;  %v385_v18 = vpop.f32.mrf.mxu3 }
  0xcf   : > { %v372_v19 = vpop.f32.mrf.mxu0  ;;  %v377_v20 = vpop.f32.mrf.mxu1  ;;  %v381_v28 = vadd.f32 %v858_v15, %v380_v17  ;;  %v386_v38 = vadd.f32 %v858_v15, %v385_v18 }
  0xd0   : > { %v373_v22 = vadd.f32 %v858_v15, %v372_v19  ;;  %v378_v26 = vadd.f32 %v858_v15, %v377_v20 }
  0xd1   : > { %v515_v37 = vmul.f32 %v381_v28, %v381_v28  ;;  %v517_v45 = vmul.f32 %v386_v38, %v386_v38 }
  0xd2   : > { %v495_v24 = vadd.f32 %v373_v22, %v371_v16  ;;  %v512_v25 = vmul.f32 %v373_v22, %v373_v22  ;;  %v514_v32 = vmul.f32 %v378_v26, %v378_v26 }
  0xd4   : > { %v519_v29 = vadd.f32 %v512_v25, %v511_v23  ;;  %v496_v30 = vadd.f32 %v495_v24, %v376_v21 }
  0xd6   : > { %v497_v31 = vadd.f32 %v496_v30, %v378_v26  ;;  %v520_v33 = vadd.f32 %v519_v29, %v513_v27  ;;  %v382_v34 = vpop.f32.mrf.mxu2  ;;  %v387_v36 = vpop.f32.mrf.mxu3 }
  0xd7   : > { %v383_v35 = vadd.f32 %v858_v15, %v382_v34  ;;  %v388_v44 = vadd.f32 %v858_v15, %v387_v36 }
  0xd8   : > { %v521_v39 = vadd.f32 %v520_v33, %v514_v32  ;;  %v498_v40 = vadd.f32 %v497_v31, %v381_v28 }
  0xd9   : > { %v516_v42 = vmul.f32 %v383_v35, %v383_v35  ;;  %v518_v49 = vmul.f32 %v388_v44, %v388_v44 }
  0xda   : > { %v499_v41 = vadd.f32 %v498_v40, %v383_v35  ;;  %v522_v43 = vadd.f32 %v521_v39, %v515_v37 }
  0xdc   : > { %v523_v46 = vadd.f32 %v522_v43, %v516_v42  ;;  %v500_v47 = vadd.f32 %v499_v41, %v386_v38 }
  0xde   : > { %v501_v48 = vadd.f32 %v500_v47, %v388_v44  ;;  %v524_v50 = vadd.f32 %v523_v46, %v517_v45 }
  0xe0   : > { %v502_v51 = vrot.slane %v501_v48, 4  ;;  %v525_v52 = vadd.f32 %v524_v50, %v518_v49 }
  0xe2   : > { %v503_v53 = vadd.f32 %v502_v51, %v501_v48  ;;  %v526_v54 = vrot.slane %v525_v52, 4 }
  0xe4   : > { %v504_v55 = vrot.slane %v503_v53, 2  ;;  %v527_v56 = vadd.f32 %v526_v54, %v525_v52 }
  0xe6   : > { %v505_v57 = vadd.f32 %v504_v55, %v503_v53  ;;  %v528_v58 = vrot.slane %v527_v56, 2 }
  0xe8   : > { %v506_v59 = vrot.slane %v505_v57, 1  ;;  %v529_v60 = vadd.f32 %v528_v58, %v527_v56 }
  0xea   : > { %v507_v62 = vadd.f32 %v506_v59, %v505_v57  ;;  %v530_v63 = vrot.slane %v529_v60, 1 }
  0xec   : > { %v531_v1 = vadd.f32 %v530_v63, %v529_v60  ;;  %v508_v2 = vadd.f32 %v507_v62, %v494_v61 }
  0xee   : > { %509 = vst [vmem:[%s1192_s1] sm:$0x1] %v508_v2  ;;  %v532_v3 = vadd.f32 %v531_v1, %v510_v0 }
  0xef   : > { %946 = shalt.err (!%p943_p0)
}
  0xf0   : > { %783 = dma.vmem_to_hbm [thread:$0]  (%p1150_p5), %s550_s29, 16, %s552_s5, %s535_s18   ;;  %533 = vst [vmem:[%s1196_s23] sm:$0x1] %v532_v3 }
  0xf1   : > { %s539_s1 = scalar_lea.sflag [#allocation9], %s1173_s10  ;;  %s961_s9 = sshra.s32 %s565_s24, 4  ;;  %s962_s9 = int_to_ptr.hbm [resolvable:$true] %s961_s9 }
  0xf2   : > { %s963_s11 = scalar_lea.hbm %s962_s9, 1  ;;  %s967_s13 = scalar_lea.hbm %s1278_s4, 2 }
  0xf3   : > { %p964_p3 = scmp.ne.s32.totalorder %s962_s9, %s963_s11  ;;  %p968_p2 = scmp.lt.s32.totalorder %s962_s9, %s1278_s4 }
  0xf4   : > { %p969_p1 = scmp.lt.s32.totalorder %s967_s13, %s963_s11 }
  0xf5   : > { %p965_p7 = pnand %p964_p3, %p1150_p5 }
  0xf6   : > { %p970_p4 = por %p969_p1, %p968_p2 }
  0xf7   : > { %p966_p9 = pneg %p965_p7 }
  0xf9   : > { %p971_p8 = pnand %p970_p4, %p966_p9 }
  0xfb   : > { %974 = shalt.err (!%p971_p8)
}
  0xfc   : > { %784 = dma.vmem_to_hbm [thread:$0]  (%p1150_p5), %s1220_s6, 16, %s565_s24, %s539_s1  }
  0xfd PF: > { %s576_s10 = sand.u32 1, %s1017_s15   ;;  %p796_p10 = pnand %p683_p11, %p1117_p6 }
  0xfe   : > { %s577_s23 = scalar_lea.sflag [#allocation4], %s576_s10 }
  0xff   : > { %p797_p12 = pneg %p796_p10 }
 0x101   : > { %1008 = dma.done.wait (%p797_p12), %s577_s23, 16  }
 0x102   : > { %1010 = vsyncadd (%p797_p12), %s577_s23, 4294967280  ;;  %s586_s29 = scalar_lea.sflag [#allocation9], %s576_s10 }
 0x103   : > { %1012 = dma.done.wait (%p797_p12), %s586_s29, 16  }
 0x104   : > { %1014 = vsyncadd (%p797_p12), %s586_s29, 4294967280  ;;  %s25_s20 = sadd.s32 1, %s1037_s20   ;;  %s1294_s12 = sld [smem:[#allocation14_spill]] }
 0x105   : > { %p22_p13 = scmp.ge.s32.totalorder %s25_s20, 4   ;;  %s1295_s15 = smov %s1021_s16 }
 0x106   : > { %s1296_s16 = smov %s1025_s17  ;;  %s1297_s17 = smov %s1159_s22 }
 0x107   : > { %s1298_s18 = smov %s1033_s19  ;;  %24 = sbr.rel (!%p22_p13) target bundleno = 11 (0xb), region = 110 }
 0x10a   : > { %s1299_s19 = smov %s1294_s12 }
 0x10c   :  { %591 = vsyncpa [#allocation3], 1 }
 0x10d   :  { %593 = vsyncpa [#allocation3 + $0x1], 1 }
 0x10e   :  { %594 = vsyncpa [#allocation6], 1 }
 0x10f   :  { %595 = vsyncpa [#allocation4], 1 }
 0x110   :  { %597 = vsyncpa [#allocation4 + $0x1], 1 }
 0x111   :  { %598 = vsyncpa [#allocation9], 1 }
 0x112   :  { %600 = vsyncpa [#allocation9 + $0x1], 1 }

</bundles_post_ra>
